<compile_context>
chip_gen: v5e
topology: v5e:2x2
jax: 0.10.0
libtpu: 0.0.40
codegen_flags: <defaults>
</compile_context>

<pallas_src>
import jax
import jax.numpy as jnp
from jax.experimental import pallas as pl
from jax.experimental.pallas import tpu as pltpu


def _two_mlp_head_kernel(x_ref, w6_ref, b6_ref, w7_ref, b7_ref, o_ref, acc_ref):
    k = pl.program_id(1)

    @pl.when(k == 0)
    def _():
        acc_ref[...] = jnp.zeros_like(acc_ref)

    # fc6 partial product: (tm, tk) . (tk, rep) -> (tm, rep), f32 accumulation.
    # x arrives in f32 and is cast to bf16 here (cheap VPU op, hidden under MXU).
    acc_ref[...] += jnp.dot(
        x_ref[...].astype(jnp.bfloat16), w6_ref[...],
        preferred_element_type=jnp.float32,
    )

    @pl.when(k == pl.num_programs(1) - 1)
    def _():
        h = jnp.maximum(acc_ref[...] + b6_ref[...], 0.0)        # fc6 bias + ReLU (f32)
        # fc7: (tm, rep) . (rep, rep) -> (tm, rep), f32 accumulation.
        y = jnp.dot(h.astype(w7_ref.dtype), w7_ref[...],
                    preferred_element_type=jnp.float32)
        y = jnp.maximum(y + b7_ref[...], 0.0)                   # fc7 bias + ReLU (f32)
        o_ref[...] = y.astype(o_ref.dtype)


def _round_up(a, b):
    return ((a + b - 1) // b) * b


def two_mlp_head(x_nchw, w6, b6, w7, b7, *, max_block_m=256, block_k=2048):
    """x_nchw: (N, C, H, W); w6: (rep, in), b6: (rep,), w7: (rep, rep), b7: (rep,).
    Returns (N, rep) float32, matching TwoMLPHead.forward semantics."""
    n = x_nchw.shape[0]
    x2d = x_nchw.reshape(n, -1).astype(jnp.float32)   # == torch flatten(start_dim=1)
    in_features = x2d.shape[1]
    rep = w6.shape[0]

    # ---- M tiling: fill the 256-wide MXU when the batch allows, but keep at
    # least two grid steps for mid-size batches so both v7x TCs get a tile.
    n_pad8 = _round_up(n, 8)
    if n_pad8 <= 16:
        tm = n_pad8
    elif n_pad8 <= 2 * max_block_m:
        tm = _round_up(-(-n_pad8 // 2), 8)            # two tiles
    else:
        tm = max_block_m
    n_pad = _round_up(n, tm)

    # ---- K tiling: resident W6 for small in_features; stream K blocks at
    # FRCNN scale (~12.5k) to keep peak VMEM small and overlap DMA with MXU.
    if in_features <= 4096:
        tk, k_pad = in_features, in_features
    else:
        tk = block_k
        k_pad = _round_up(in_features, tk)
    k_tiles = k_pad // tk
    m_tiles = n_pad // tm

    # Zero-pad rows / K (padding contributes 0 to the dot products; padded
    # rows are sliced off after the call).
    if n_pad != n or k_pad != in_features:
        x2d = jnp.pad(x2d, ((0, n_pad - n), (0, k_pad - in_features)))

    # One-time (jit-amortized) transposes: contraction dim lands on the RHS
    # sublane axis -> native MXU layout, no per-step transposes in the kernel.
    w6t = w6.astype(jnp.bfloat16).T                   # (in, rep)
    if k_pad != in_features:
        w6t = jnp.pad(w6t, ((0, k_pad - in_features), (0, 0)))
    w7t = w7.astype(jnp.bfloat16).T                   # (rep, rep)
    b6_2d = b6.reshape(1, rep).astype(jnp.float32)
    b7_2d = b7.reshape(1, rep).astype(jnp.float32)

    # Constant-index blocks only ever need one buffer; W6 keeps the default
    # double-buffering when it is streamed along K.
    single = pl.Buffered(1)
    w6_buffering = single if k_tiles == 1 else pl.Buffered(2)

    # VMEM working set (bytes): W6 block(s) + resident W7/biases + double-
    # buffered x/out tiles + accumulator scratch, with headroom; cap at 48 MiB
    # so there is slack under v7x's 64 MiB/TC physical VMEM.
    w6_bufs = 1 if k_tiles == 1 else 2
    work_bytes = (
        w6_bufs * tk * rep * 2            # W6 bf16 block(s)
        + rep * rep * 2                   # W7 bf16, resident, single buffer
        + 2 * 8 * rep * 4                 # biases (sublane-padded to 8 rows)
        + 2 * tm * tk * 4                 # x f32 tiles, double buffered
        + 2 * tm * rep * 4                # out f32 tiles, double buffered
        + tm * rep * 4                    # accumulator scratch
    )
    vmem_budget = min(max(work_bytes + (4 << 20), 16 << 20), 48 << 20)

    cost = pl.CostEstimate(
        flops=2 * n_pad * (k_pad * rep + rep * rep),
        transcendentals=0,
        bytes_accessed=(
            n_pad * k_pad * 4                         # x (f32)
            + m_tiles * k_pad * rep * 2               # W6 re-read per M tile when streamed
            + rep * rep * 2 + 2 * rep * 4             # W7 + biases
            + n_pad * rep * 4                         # output
        ),
    )

    out = pl.pallas_call(
        _two_mlp_head_kernel,
        out_shape=jax.ShapeDtypeStruct((n_pad, rep), jnp.float32),
        grid_spec=pltpu.PrefetchScalarGridSpec(
            num_scalar_prefetch=0,
            grid=(m_tiles, k_tiles),
            in_specs=[
                pl.BlockSpec((tm, tk), lambda i, k: (i, k)),                      # x tile
                pl.BlockSpec((tk, rep), lambda i, k: (k, 0),
                             pipeline_mode=w6_buffering),                         # W6 (K-major)
                pl.BlockSpec((1, rep), lambda i, k: (0, 0), pipeline_mode=single),  # b6
                pl.BlockSpec((rep, rep), lambda i, k: (0, 0), pipeline_mode=single),  # W7
                pl.BlockSpec((1, rep), lambda i, k: (0, 0), pipeline_mode=single),  # b7
            ],
            out_specs=pl.BlockSpec((tm, rep), lambda i, k: (i, 0)),
            scratch_shapes=[pltpu.VMEM((tm, rep), jnp.float32)],
        ),
        compiler_params=pltpu.CompilerParams(
            dimension_semantics=("parallel", "arbitrary"),   # M across TCs, K is reduction
            vmem_limit_bytes=vmem_budget,
        ),
        cost_estimate=cost,
    )(x2d, w6t, b6_2d, w7t, b7_2d)

    return out[:n] if n_pad != n else out


def _reference(x_nchw, w6, b6, w7, b7):
    x = x_nchw.reshape(x_nchw.shape[0], -1)
    h = jnp.maximum(x @ w6.T + b6, 0.0)
    return jnp.maximum(h @ w7.T + b7, 0.0)


if __name__ == "__main__":
    # Small shapes consistent with the module:
    #   roi-pooled features (N, C, H, W) = (2, 4, 16, 16) -> in_channels = 1024
    #   representation_size = 128
    N, C, H, W = 2, 4, 16, 16
    in_channels = C * H * W
    rep = 128

    key = jax.random.PRNGKey(0)
    kx, k6w, k6b, k7w, k7b = jax.random.split(key, 5)

    x = jax.random.normal(kx, (N, C, H, W), dtype=jnp.float32)
    # nn.Linear parameter shapes: weight (out, in), bias (out,)
    w6 = jax.random.normal(k6w, (rep, in_channels), dtype=jnp.float32) * 0.02
    b6 = jax.random.normal(k6b, (rep,), dtype=jnp.float32) * 0.01
    w7 = jax.random.normal(k7w, (rep, rep), dtype=jnp.float32) * 0.02
    b7 = jax.random.normal(k7b, (rep,), dtype=jnp.float32) * 0.01

    out = jax.block_until_ready(two_mlp_head(x, w6, b6, w7, b7))

    ref = _reference(x, w6, b6, w7, b7)
    assert out.shape == (N, rep), out.shape
    # bf16 matmul operands with f32 accumulation -> relaxed tolerance vs f32 ref.
    assert jnp.allclose(out, ref, atol=3e-2, rtol=3e-2), float(
        jnp.max(jnp.abs(out - ref)))

    print("KERNEL_OK")
</pallas_src>

<mosaic_0001>
module attributes {stable_mosaic.version = 11 : i64} {
  func.func @_two_mlp_head_kernel(%arg0: i32, %arg1: i32, %arg2: memref<8x1024xf32, #tpu.memory_space<vmem>>, %arg3: memref<1024x128xbf16, #tpu.memory_space<vmem>>, %arg4: memref<1x128xf32, #tpu.memory_space<vmem>>, %arg5: memref<128x128xbf16, #tpu.memory_space<vmem>>, %arg6: memref<1x128xf32, #tpu.memory_space<vmem>>, %arg7: memref<8x128xf32, #tpu.memory_space<vmem>>, %arg8: memref<8x128xf32, #tpu.memory_space<vmem>>) attributes {dimension_semantics = [#tpu.dimension_semantics<parallel>, #tpu.dimension_semantics<arbitrary>], iteration_bounds = array<i64: 1, 1>, scalar_prefetch = 0 : i64, scratch_operands = 1 : i64, tpu.core_type = #tpu.core_type<tc>, window_params = [{transform_indices = @transform_0, window_bounds = array<i64: 8, 1024>}, {pipeline_mode = #tpu.pipeline_mode<synchronous>, transform_indices = @transform_1, window_bounds = array<i64: 1024, 128>}, {pipeline_mode = #tpu.pipeline_mode<synchronous>, transform_indices = @transform_2, window_bounds = array<i64: 1, 128>}, {pipeline_mode = #tpu.pipeline_mode<synchronous>, transform_indices = @transform_3, window_bounds = array<i64: 128, 128>}, {pipeline_mode = #tpu.pipeline_mode<synchronous>, transform_indices = @transform_4, window_bounds = array<i64: 1, 128>}, {transform_indices = @transform_5, window_bounds = array<i64: 8, 128>}]} {
    %c0_i32 = arith.constant 0 : i32
    %0 = arith.cmpi eq, %arg1, %c0_i32 : i32
    %1 = arith.extui %0 : i1 to i32
    %c0_i32_0 = arith.constant 0 : i32
    %2 = arith.cmpi ne, %1, %c0_i32_0 : i32
    scf.if %2 {
      %cst_10 = arith.constant 0.000000e+00 : f32
      %13 = vector.broadcast %cst_10 : f32 to vector<8x128xf32>
      %c0_11 = arith.constant 0 : index
      %c0_12 = arith.constant 0 : index
      %14 = vector.load %arg8[%c0_11, %c0_12] : memref<8x128xf32, #tpu.memory_space<vmem>>, vector<8x128xf32>
      tpu.vector_store %arg8[%c0_11, %c0_12], %13 {strides = array<i32>} : memref<8x128xf32, #tpu.memory_space<vmem>>, vector<8x128xf32>,
    } else {
    }
    %c0 = arith.constant 0 : index
    %c0_1 = arith.constant 0 : index
    %3 = vector.load %arg8[%c0, %c0_1] : memref<8x128xf32, #tpu.memory_space<vmem>>, vector<8x128xf32>
    %c0_2 = arith.constant 0 : index
    %c0_3 = arith.constant 0 : index
    %4 = vector.load %arg2[%c0_2, %c0_3] : memref<8x1024xf32, #tpu.memory_space<vmem>>, vector<8x1024xf32>
    %5 = arith.truncf %4 : vector<8x1024xf32> to vector<8x1024xbf16>
    %c0_4 = arith.constant 0 : index
    %c0_5 = arith.constant 0 : index
    %6 = vector.load %arg3[%c0_4, %c0_5] : memref<1024x128xbf16, #tpu.memory_space<vmem>>, vector<1024x128xbf16>
    %cst = arith.constant dense<0.000000e+00> : vector<8x128xf32>
    %7 = tpu.matmul %5, %6, %cst {dimension_numbers = #tpu.dot_dimension_numbers<[1], [0], [0], [1], [0, 0, 1, 1], [], []>} : vector<8x1024xbf16>, vector<1024x128xbf16>, vector<8x128xf32> -> vector<8x128xf32>
    %8 = arith.addf %3, %7 : vector<8x128xf32>
    %c0_6 = arith.constant 0 : index
    %c0_7 = arith.constant 0 : index
    %9 = vector.load %arg8[%c0_6, %c0_7] : memref<8x128xf32, #tpu.memory_space<vmem>>, vector<8x128xf32>
    tpu.vector_store %arg8[%c0_6, %c0_7], %8 {strides = array<i32>} : memref<8x128xf32, #tpu.memory_space<vmem>>, vector<8x128xf32>,
    %c0_i32_8 = arith.constant 0 : i32
    %10 = arith.cmpi eq, %arg1, %c0_i32_8 : i32
    %11 = arith.extui %10 : i1 to i32
    %c0_i32_9 = arith.constant 0 : i32
    %12 = arith.cmpi ne, %11, %c0_i32_9 : i32
    scf.if %12 {
      %c0_10 = arith.constant 0 : index
      %c0_11 = arith.constant 0 : index
      %13 = vector.load %arg8[%c0_10, %c0_11] : memref<8x128xf32, #tpu.memory_space<vmem>>, vector<8x128xf32>
      %c0_12 = arith.constant 0 : index
      %c0_13 = arith.constant 0 : index
      %14 = vector.load %arg4[%c0_12, %c0_13] : memref<1x128xf32, #tpu.memory_space<vmem>>, vector<1x128xf32>
      %15 = vector.broadcast %14 : vector<1x128xf32> to vector<8x128xf32>
      %16 = arith.addf %13, %15 : vector<8x128xf32>
      %cst_14 = arith.constant 0.000000e+00 : f32
      %17 = vector.broadcast %cst_14 : f32 to vector<8x128xf32>
      %18 = arith.maximumf %16, %17 : vector<8x128xf32>
      %19 = arith.truncf %18 : vector<8x128xf32> to vector<8x128xbf16>
      %c0_15 = arith.constant 0 : index
      %c0_16 = arith.constant 0 : index
      %20 = vector.load %arg5[%c0_15, %c0_16] : memref<128x128xbf16, #tpu.memory_space<vmem>>, vector<128x128xbf16>
      %cst_17 = arith.constant dense<0.000000e+00> : vector<8x128xf32>
      %21 = tpu.matmul %19, %20, %cst_17 {dimension_numbers = #tpu.dot_dimension_numbers<[1], [0], [0], [1], [0, 0, 1, 1], [], []>} : vector<8x128xbf16>, vector<128x128xbf16>, vector<8x128xf32> -> vector<8x128xf32>
      %c0_18 = arith.constant 0 : index
      %c0_19 = arith.constant 0 : index
      %22 = vector.load %arg6[%c0_18, %c0_19] : memref<1x128xf32, #tpu.memory_space<vmem>>, vector<1x128xf32>
      %23 = vector.broadcast %22 : vector<1x128xf32> to vector<8x128xf32>
      %24 = arith.addf %21, %23 : vector<8x128xf32>
      %cst_20 = arith.constant 0.000000e+00 : f32
      %25 = vector.broadcast %cst_20 : f32 to vector<8x128xf32>
      %26 = arith.maximumf %24, %25 : vector<8x128xf32>
      %c0_21 = arith.constant 0 : index
      %c0_22 = arith.constant 0 : index
      %27 = vector.load %arg7[%c0_21, %c0_22] : memref<8x128xf32, #tpu.memory_space<vmem>>, vector<8x128xf32>
      tpu.vector_store %arg7[%c0_21, %c0_22], %26 {strides = array<i32>} : memref<8x128xf32, #tpu.memory_space<vmem>>, vector<8x128xf32>,
    } else {
    }
    return
  }
  func.func @transform_0(%arg0: i32, %arg1: i32) -> (i32, i32) {
    %c0_i32 = arith.constant 0 : i32
    return %arg0, %arg1 : i32, i32
  }
  func.func @transform_1(%arg0: i32, %arg1: i32) -> (i32, i32) {
    %c0_i32 = arith.constant 0 : i32
    %c0_i32_0 = arith.constant 0 : i32
    return %arg1, %c0_i32 : i32, i32
  }
  func.func @transform_2(%arg0: i32, %arg1: i32) -> (i32, i32) {
    %c0_i32 = arith.constant 0 : i32
    %c0_i32_0 = arith.constant 0 : i32
    %c0_i32_1 = arith.constant 0 : i32
    return %c0_i32, %c0_i32_0 : i32, i32
  }
  func.func @transform_3(%arg0: i32, %arg1: i32) -> (i32, i32) {
    %c0_i32 = arith.constant 0 : i32
    %c0_i32_0 = arith.constant 0 : i32
    %c0_i32_1 = arith.constant 0 : i32
    return %c0_i32, %c0_i32_0 : i32, i32
  }
  func.func @transform_4(%arg0: i32, %arg1: i32) -> (i32, i32) {
    %c0_i32 = arith.constant 0 : i32
    %c0_i32_0 = arith.constant 0 : i32
    %c0_i32_1 = arith.constant 0 : i32
    return %c0_i32, %c0_i32_0 : i32, i32
  }
  func.func @transform_5(%arg0: i32, %arg1: i32) -> (i32, i32) {
    %c0_i32 = arith.constant 0 : i32
    %c0_i32_0 = arith.constant 0 : i32
    return %arg0, %c0_i32 : i32, i32
  }
}

</mosaic_0001>

<bundles_post_ra>
// kernel: tpu_custom_call.1
= control target key start
LH: loop header
LB: loop body
LE: loop exit
PB: predicated region body
PF: predicated region fallthrough
CT: control target
= control target key end

     0   :  { %10 = vsyncpa [#allocation4], 0  ;;  %s1342_s0 = inlined_call_operand.hbm [shape: f32[8,1024], index: 0, kind: input, shape index: {}]   ;;  %s1343_s1 = inlined_call_operand.hbm [shape: bf16[1024,128], index: 1, kind: input, shape index: {}]   ;;  %s1344_s2 = inlined_call_operand.vmem [shape: f32[1,128], index: 2, kind: input, shape index: {}]   ;;  %s1345_s3 = inlined_call_operand.hbm [shape: bf16[128,128], index: 3, kind: input, shape index: {}]   ;;  %s1346_s4 = inlined_call_operand.vmem [shape: f32[1,128], index: 4, kind: input, shape index: {}]   ;;  %s1347_s5 = inlined_call_operand.hbm [shape: f32[8,128], index: 5, kind: output, shape index: {}]  }
   0x1   :  { %11 = vsyncpa [#allocation7], 0  ;;  %s28_s20 = sshll.u32 %s1343_s1, 4  ;;  %s29_s20 = int_to_ptr.hbm [resolvable:$true] %s28_s20 }
   0x2   :  { %12 = vsyncpa [#allocation5], 0  ;;  %s1288_s21 = smov [#allocation6]   ;;  %s18_s25 = sshll.u32 %s1342_s0, 4  ;;  %s19_s25 = int_to_ptr.hbm [resolvable:$true] %s18_s25 }
   0x3   :  { %s30_s22 = sshll.u32 %s1288_s21, 4  ;;  %s1289_s26 = smov 64   ;;  %s31_s22 = int_to_ptr.vmem [resolvable:$true] %s30_s22 }
   0x4   :  { %s1290_s27 = smov 4   ;;  %s1291_s28 = smov [#allocation3]  }
   0x5   :  { %36 = dma.hbm_to_vmem [thread:$0]  %s29_s20, 8192, %s31_s22, [#allocation7], %s1289_s26, %s1289_s26, %s1290_s27  }
   0x6   :  { %s20_s29 = sshll.u32 %s1291_s28, 4  ;;  %s43_s7 = sshll.u32 %s1345_s3, 4  ;;  %s21_s29 = int_to_ptr.vmem [resolvable:$true] %s20_s29  ;;  %s44_s7 = int_to_ptr.hbm [resolvable:$true] %s43_s7 }
   0x7   :  { %23 = dma.hbm_to_vmem [thread:$0]  %s19_s25, 1024, %s21_s29, [#allocation4]  }
   0x8   :  { %s1292_s1 = smov [#allocation8]  }
   0x9   :  { %s45_s8 = sshll.u32 %s1292_s1, 4  ;;  %s46_s8 = int_to_ptr.vmem [resolvable:$true] %s45_s8 }
   0xa   :  { %51 = dma.hbm_to_vmem [thread:$0]  %s44_s7, 1024, %s46_s8, [#allocation7], %s1289_s26, %s1289_s26, %s1290_s27  }
   0xb   :  { %1282 = dma.done.wait [#allocation4], 1024  }
   0xc   :  { %1283 = vsyncadd [#allocation4], 4294966272 }
   0xd   :  { %1284 = dma.done.wait [#allocation7], 9216  }
   0xe   :  { %1285 = vsyncadd [#allocation7], 4294958080  ;;  %v1113_v0 = vld [vmem:[#allocation6 + $0x38] sm:$0xff]  ;;  %v1112_v4 = vld [vmem:[#allocation6 + $0x30] sm:$0xff]  ;;  %s1293_s11 = smov [#allocation9]  }
   0xf   :  { %v1121_v1 = vld [vmem:[#allocation6 + $0x78] sm:$0xff]  ;;  %600 = vmatpush.bf16.msra.mxu0 %v1113_v0  ;;  %v1120_v5 = vld [vmem:[#allocation6 + $0x70] sm:$0xff]  ;;  %v1111_v8 = vld [vmem:[#allocation6 + $0x28] sm:$0xff]  ;;  %s805_s12 = sshll.u32 %s1293_s11, 4  ;;  %s806_s12 = int_to_ptr.vmem [resolvable:$true] %s805_s12 }
  0x10   :  { %v1129_v2 = vld [vmem:[#allocation6 + $0xb8] sm:$0xff]  ;;  %613 = vmatpush.bf16.msra.mxu1 %v1121_v1  ;;  %v1128_v6 = vld [vmem:[#allocation6 + $0xb0] sm:$0xff]  ;;  %v1119_v9 = vld [vmem:[#allocation6 + $0x68] sm:$0xff] }
  0x11   :  { %v1137_v3 = vld [vmem:[#allocation6 + $0xf8] sm:$0xff]  ;;  %626 = vmatpush.bf16.msra.mxu2 %v1129_v2  ;;  %v1136_v7 = vld [vmem:[#allocation6 + $0xf0] sm:$0xff]  ;;  %v1127_v10 = vld [vmem:[#allocation6 + $0xa8] sm:$0xff] }
  0x12   :  { %639 = vmatpush.bf16.msra.mxu3 %v1137_v3  ;;  %v1135_v11 = vld [vmem:[#allocation6 + $0xe8] sm:$0xff]  ;;  %v1110_v12 = vld [vmem:[#allocation6 + $0x20] sm:$0xff]  ;;  %v1109_v16 = vld [vmem:[#allocation6 + $0x18] sm:$0xff] }
  0x13   :  { %601 = vmatpush.bf16.msra.mxu0 %v1112_v4  ;;  %v1118_v13 = vld [vmem:[#allocation6 + $0x60] sm:$0xff]  ;;  %v1117_v17 = vld [vmem:[#allocation6 + $0x58] sm:$0xff]  ;;  %v1108_v20 = vld [vmem:[#allocation6 + $0x10] sm:$0xff] }
  0x14   :  { %614 = vmatpush.bf16.msra.mxu1 %v1120_v5  ;;  %v1126_v14 = vld [vmem:[#allocation6 + $0xa0] sm:$0xff]  ;;  %v1125_v18 = vld [vmem:[#allocation6 + $0x98] sm:$0xff]  ;;  %v1116_v21 = vld [vmem:[#allocation6 + $0x50] sm:$0xff] }
  0x15   :  { %627 = vmatpush.bf16.msra.mxu2 %v1128_v6  ;;  %v1134_v15 = vld [vmem:[#allocation6 + $0xe0] sm:$0xff]  ;;  %v1133_v19 = vld [vmem:[#allocation6 + $0xd8] sm:$0xff]  ;;  %v1124_v22 = vld [vmem:[#allocation6 + $0x90] sm:$0xff] }
  0x16   :  { %640 = vmatpush.bf16.msra.mxu3 %v1136_v7  ;;  %v1132_v23 = vld [vmem:[#allocation6 + $0xd0] sm:$0xff]  ;;  %v1107_v24 = vld [vmem:[#allocation6 + $0x8] sm:$0xff]  ;;  %v1106_v28 = vld [vmem:[#allocation6] sm:$0xff] }
  0x17   :  { %602 = vmatpush.bf16.msra.mxu0 %v1111_v8  ;;  %v1115_v25 = vld [vmem:[#allocation6 + $0x48] sm:$0xff]  ;;  %v1114_v29 = vld [vmem:[#allocation6 + $0x40] sm:$0xff]  ;;  %v1145_v32 = vld [vmem:[#allocation6 + $0x138] sm:$0xff] }
  0x18   :  { %615 = vmatpush.bf16.msra.mxu1 %v1119_v9  ;;  %v1123_v26 = vld [vmem:[#allocation6 + $0x88] sm:$0xff]  ;;  %v1122_v30 = vld [vmem:[#allocation6 + $0x80] sm:$0xff]  ;;  %v74_v33 = vld [vmem:[#allocation3 + $0x10] sm:$0xff] }
  0x19   :  { %628 = vmatpush.bf16.msra.mxu2 %v1127_v10  ;;  %v1131_v27 = vld [vmem:[#allocation6 + $0xc8] sm:$0xff]  ;;  %v1130_v31 = vld [vmem:[#allocation6 + $0xc0] sm:$0xff]  ;;  %v1153_v35 = vld [vmem:[#allocation6 + $0x178] sm:$0xff]  ;;  %v82_v40 = vpack.c.bf16 %v74_v33, %v74_v33 }
  0x1a   :  { %641 = vmatpush.bf16.msra.mxu3 %v1135_v11  ;;  %v72_v34 = vld [vmem:[#allocation3] sm:$0xff]  ;;  %v75_v36 = vld [vmem:[#allocation3 + $0x18] sm:$0xff]  ;;  %v73_v37 = vld [vmem:[#allocation3 + $0x8] sm:$0xff] }
  0x1b   :  { %603 = vmatpush.bf16.msra.mxu0 %v1110_v12  ;;  %v1161_v38 = vld [vmem:[#allocation6 + $0x1b8] sm:$0xff]  ;;  %v80_v41 = vpack.c.bf16 %v72_v34, %v72_v34  ;;  %v83_v42 = vpack.c.bf16 %v75_v36, %v75_v36  ;;  %v81_v43 = vpack.c.bf16 %v73_v37, %v73_v37  ;;  %v1144_v44 = vld [vmem:[#allocation6 + $0x130] sm:$0xff]  ;;  %v1143_v48 = vld [vmem:[#allocation6 + $0x128] sm:$0xff] }
  0x1c   :  { %616 = vmatpush.bf16.msra.mxu1 %v1118_v13  ;;  %v1169_v39 = vld [vmem:[#allocation6 + $0x1f8] sm:$0xff]  ;;  %v1152_v45 = vld [vmem:[#allocation6 + $0x170] sm:$0xff]  ;;  %v1151_v49 = vld [vmem:[#allocation6 + $0x168] sm:$0xff] }
  0x1d   :  { %629 = vmatpush.bf16.msra.mxu2 %v1126_v14  ;;  %v1160_v46 = vld [vmem:[#allocation6 + $0x1b0] sm:$0xff]  ;;  %v1159_v50 = vld [vmem:[#allocation6 + $0x1a8] sm:$0xff]  ;;  %v1142_v52 = vld [vmem:[#allocation6 + $0x120] sm:$0xff] }
  0x1e   :  { %642 = vmatpush.bf16.msra.mxu3 %v1134_v15  ;;  %v1168_v47 = vld [vmem:[#allocation6 + $0x1f0] sm:$0xff]  ;;  %v1167_v51 = vld [vmem:[#allocation6 + $0x1e8] sm:$0xff]  ;;  %v1150_v53 = vld [vmem:[#allocation6 + $0x160] sm:$0xff] }
  0x1f   :  { %604 = vmatpush.bf16.msra.mxu0 %v1109_v16  ;;  %v1158_v54 = vld [vmem:[#allocation6 + $0x1a0] sm:$0xff]  ;;  %v1141_v56 = vld [vmem:[#allocation6 + $0x118] sm:$0xff]  ;;  %v1140_v60 = vld [vmem:[#allocation6 + $0x110] sm:$0xff] }
  0x20   :  { %617 = vmatpush.bf16.msra.mxu1 %v1117_v17  ;;  %v1166_v55 = vld [vmem:[#allocation6 + $0x1e0] sm:$0xff]  ;;  %v1149_v57 = vld [vmem:[#allocation6 + $0x158] sm:$0xff]  ;;  %v1148_v61 = vld [vmem:[#allocation6 + $0x150] sm:$0xff] }
  0x21   :  { %630 = vmatpush.bf16.msra.mxu2 %v1125_v18  ;;  %v1157_v58 = vld [vmem:[#allocation6 + $0x198] sm:$0xff]  ;;  %v1156_v62 = vld [vmem:[#allocation6 + $0x190] sm:$0xff]  ;;  %v1139_v0 = vld [vmem:[#allocation6 + $0x108] sm:$0xff] }
  0x22   :  { %643 = vmatpush.bf16.msra.mxu3 %v1133_v19  ;;  %v1165_v59 = vld [vmem:[#allocation6 + $0x1d8] sm:$0xff]  ;;  %v1164_v63 = vld [vmem:[#allocation6 + $0x1d0] sm:$0xff]  ;;  %v1147_v1 = vld [vmem:[#allocation6 + $0x148] sm:$0xff] }
  0x23   :  { %605 = vmatpush.bf16.msra.mxu0 %v1108_v20  ;;  %v1155_v2 = vld [vmem:[#allocation6 + $0x188] sm:$0xff]  ;;  %v1138_v4 = vld [vmem:[#allocation6 + $0x100] sm:$0xff]  ;;  %v78_v10 = vld [vmem:[#allocation3 + $0x30] sm:$0xff] }
  0x24   :  { %618 = vmatpush.bf16.msra.mxu1 %v1116_v21  ;;  %v1163_v3 = vld [vmem:[#allocation6 + $0x1c8] sm:$0xff]  ;;  %v1146_v5 = vld [vmem:[#allocation6 + $0x140] sm:$0xff]  ;;  %v79_v11 = vld [vmem:[#allocation3 + $0x38] sm:$0xff]  ;;  %v86_v14 = vpack.c.bf16 %v78_v10, %v78_v10 }
  0x25   :  { %631 = vmatpush.bf16.msra.mxu2 %v1124_v22  ;;  %v1154_v6 = vld [vmem:[#allocation6 + $0x180] sm:$0xff]  ;;  %v77_v8 = vld [vmem:[#allocation3 + $0x28] sm:$0xff]  ;;  %v87_v15 = vpack.c.bf16 %v79_v11, %v79_v11  ;;  %v1177_v16 = vld [vmem:[#allocation8 + $0x38] sm:$0xff] }
  0x26   :  { %644 = vmatpush.bf16.msra.mxu3 %v1132_v23  ;;  %v76_v7 = vld [vmem:[#allocation3 + $0x20] sm:$0xff]  ;;  %v85_v13 = vpack.c.bf16 %v77_v8, %v77_v8  ;;  %v1176_v17 = vld [vmem:[#allocation8 + $0x30] sm:$0xff]  ;;  %v1175_v18 = vld [vmem:[#allocation8 + $0x28] sm:$0xff] }
  0x27   :  { %606 = vmatpush.bf16.msra.mxu0 %v1107_v24  ;;  %v1162_v9 = vld [vmem:[#allocation6 + $0x1c0] sm:$0xff]  ;;  %v84_v12 = vpack.c.bf16 %v76_v7, %v76_v7  ;;  %v1173_v20 = vld [vmem:[#allocation8 + $0x18] sm:$0xff]  ;;  %v1172_v23 = vld [vmem:[#allocation8 + $0x10] sm:$0xff] }
  0x28   :  { %619 = vmatpush.bf16.msra.mxu1 %v1115_v25  ;;  %v1174_v19 = vld [vmem:[#allocation8 + $0x20] sm:$0xff]  ;;  %v1171_v25 = vld [vmem:[#allocation8 + $0x8] sm:$0xff] }
  0x29   :  { %632 = vmatpush.bf16.msra.mxu2 %v1123_v26 }
  0x2a   :  { %645 = vmatpush.bf16.msra.mxu3 %v1131_v27 }
  0x2b   :  { %607 = vmatpush.bf16.msra.mxu0 %v1106_v28 }
  0x2c   :  { %620 = vmatpush.bf16.msra.mxu1 %v1114_v29  ;;  %v1170_v29 = vld [vmem:[#allocation8] sm:$0xff] }
  0x2d   :  { %633 = vmatpush.bf16.msra.mxu2 %v1122_v30 }
  0x2e   :  { %646 = vmatpush.bf16.msra.mxu3 %v1130_v31  ;;  %608 = vmatmul.bf16.vlgmr.msra.gmra.mxu0 %v80_v41 }
  0x2f   :  { %652 = vmatpush.bf16.msrb.mxu0 %v1145_v32  ;;  %621 = vmatmul.bf16.vlgmr.msra.gmra.mxu1 %v81_v43 }
  0x30   :  { %665 = vmatpush.bf16.msrb.mxu1 %v1153_v35  ;;  %634 = vmatmul.bf16.vlgmr.msra.gmra.mxu2 %v82_v40 }
  0x31   :  { %678 = vmatpush.bf16.msrb.mxu2 %v1161_v38  ;;  %647 = vmatmul.bf16.vlgmr.msra.gmra.mxu3 %v83_v42  ;;  %v1184_v42 = vld [vmem:[%s1344_s2] ss:$0 sm:$0xff]  ;;  %s807_s2 = sshll.u32 %s1347_s5, 4  ;;  %s808_s2 = int_to_ptr.hbm [resolvable:$true] %s807_s2 }
  0x32   :  { %691 = vmatpush.bf16.msrb.mxu3 %v1169_v39 }
  0x33   :  { %653 = vmatpush.bf16.msrb.mxu0 %v1144_v44 }
  0x34   :  { %666 = vmatpush.bf16.msrb.mxu1 %v1152_v45 }
  0x35   :  { %679 = vmatpush.bf16.msrb.mxu2 %v1160_v46 }
  0x36   :  { %692 = vmatpush.bf16.msrb.mxu3 %v1168_v47 }
  0x37   :  { %654 = vmatpush.bf16.msrb.mxu0 %v1143_v48 }
  0x38   :  { %667 = vmatpush.bf16.msrb.mxu1 %v1151_v49 }
  0x39   :  { %680 = vmatpush.bf16.msrb.mxu2 %v1159_v50 }
  0x3a   :  { %693 = vmatpush.bf16.msrb.mxu3 %v1167_v51  ;;  %v1185_v51 = vld [vmem:[%s1346_s4] ss:$0 sm:$0xff] }
  0x3b   :  { %655 = vmatpush.bf16.msrb.mxu0 %v1142_v52 }
  0x3c   :  { %668 = vmatpush.bf16.msrb.mxu1 %v1150_v53 }
  0x3d   :  { %681 = vmatpush.bf16.msrb.mxu2 %v1158_v54 }
  0x3e   :  { %694 = vmatpush.bf16.msrb.mxu3 %v1166_v55 }
  0x3f   :  { %656 = vmatpush.bf16.msrb.mxu0 %v1141_v56 }
  0x40   :  { %669 = vmatpush.bf16.msrb.mxu1 %v1149_v57 }
  0x41   :  { %682 = vmatpush.bf16.msrb.mxu2 %v1157_v58 }
  0x42   :  { %695 = vmatpush.bf16.msrb.mxu3 %v1165_v59 }
  0x43   :  { %657 = vmatpush.bf16.msrb.mxu0 %v1140_v60 }
  0x44   :  { %670 = vmatpush.bf16.msrb.mxu1 %v1148_v61 }
  0x45   :  { %683 = vmatpush.bf16.msrb.mxu2 %v1156_v62 }
  0x46   :  { %696 = vmatpush.bf16.msrb.mxu3 %v1164_v63 }
  0x47   :  { %658 = vmatpush.bf16.msrb.mxu0 %v1139_v0 }
  0x48   :  { %671 = vmatpush.bf16.msrb.mxu1 %v1147_v1 }
  0x49   :  { %684 = vmatpush.bf16.msrb.mxu2 %v1155_v2 }
  0x4a   :  { %697 = vmatpush.bf16.msrb.mxu3 %v1163_v3 }
  0x4b   :  { %659 = vmatpush.bf16.msrb.mxu0 %v1138_v4 }
  0x4c   :  { %672 = vmatpush.bf16.msrb.mxu1 %v1146_v5 }
  0x4d   :  { %685 = vmatpush.bf16.msrb.mxu2 %v1154_v6 }
  0x4e   :  { %698 = vmatpush.bf16.msrb.mxu3 %v1162_v9  ;;  %660 = vmatmul.bf16.vlgmr.msrb.gmra.mxu0 %v84_v12 }
  0x4f   :  { %673 = vmatmul.bf16.vlgmr.msrb.gmra.mxu1 %v85_v13  ;;  %785 = vmatpush.bf16.msra.mxu0 %v1177_v16 }
  0x50   :  { %686 = vmatmul.bf16.vlgmr.msrb.gmra.mxu2 %v86_v14 }
  0x51   :  { %699 = vmatmul.bf16.vlgmr.msrb.gmra.mxu3 %v87_v15 }
  0x53   :  { %786 = vmatpush.bf16.msra.mxu0 %v1176_v17 }
  0x57   :  { %787 = vmatpush.bf16.msra.mxu0 %v1175_v18 }
  0x5b   :  { %788 = vmatpush.bf16.msra.mxu0 %v1174_v19 }
  0x5f   :  { %789 = vmatpush.bf16.msra.mxu0 %v1173_v20 }
  0x63   :  { %790 = vmatpush.bf16.msra.mxu0 %v1172_v23 }
  0x67   :  { %791 = vmatpush.bf16.msra.mxu0 %v1171_v25 }
  0x6b   :  { %792 = vmatpush.bf16.msra.mxu0 %v1170_v29 }
  0xab   :  { %v609_v21 = vpop.f32.mrf.mxu0 }
  0xac   :  { %v622_v22 = vpop.f32.mrf.mxu1 }
  0xad   :  { %v623_v32 = vadd.f32 %v622_v22, %v609_v21 }
  0xb3   :  { %v635_v24 = vpop.f32.mrf.mxu2  ;;  %v611_v27 = vpop.f32.mrf.mxu0 }
  0xb4   :  { %v648_v26 = vpop.f32.mrf.mxu3  ;;  %v624_v28 = vpop.f32.mrf.mxu1  ;;  %v636_v33 = vadd.f32 %v635_v24, %v623_v32 }
  0xb6   :  { %v649_v34 = vadd.f32 %v648_v26, %v636_v33 }
  0xbb   :  { %v637_v30 = vpop.f32.mrf.mxu2 }
  0xbc   :  { %v650_v31 = vpop.f32.mrf.mxu3 }
  0xcb   :  { %v661_v35 = vpop.f32.mrf.mxu0 }
  0xcc   :  { %v674_v36 = vpop.f32.mrf.mxu1  ;;  %v662_v37 = vadd.f32 %v661_v35, %v649_v34 }
  0xce   :  { %v675_v38 = vadd.f32 %v674_v36, %v662_v37 }
  0xd3   :  { %v687_v39 = vpop.f32.mrf.mxu2  ;;  %v663_v43 = vpop.f32.mrf.mxu0 }
  0xd4   :  { %v700_v40 = vpop.f32.mrf.mxu3  ;;  %v688_v41 = vadd.f32 %v687_v39, %v675_v38  ;;  %v676_v44 = vpop.f32.mrf.mxu1 }
  0xd6   :  { %v701_v45 = vadd.f32 %v700_v40, %v688_v41 }
  0xd8   :  { %v714_v46 = vadd.f32 %v1184_v42, %v701_v45 }
  0xda   :  { %v715_v47 = vmax.f32 %v714_v46, 0.0 }
  0xdb   :  { %v689_v48 = vpop.f32.mrf.mxu2 }
  0xdc   :  { %v702_v49 = vpop.f32.mrf.mxu3  ;;  %v716_v50 = vpack.c.bf16 %v715_v47, %v715_v47 }
  0xde   :  { %793 = vmatmul.bf16.vlgmr.msra.gmra.mxu0 %v716_v50 }
 0x15b   :  { %v794_v52 = vpop.f32.mrf.mxu0 }
 0x15c   :  { %v795_v53 = vadd.f32 %v1185_v51, %v794_v52 }
 0x15e   :  { %v798_v54 = vmax.f32 %v795_v53, 0.0 }
 0x160   :  { %799 = vst [vmem:[#allocation9] sm:$0xff] %v798_v54 }
 0x161   :  { %810 = dma.vmem_to_hbm [thread:$0]  %s806_s12, 128, %s808_s2, [#allocation5]  }
 0x163   :  { %v796_v55 = vpop.f32.mrf.mxu0 }
 0x164   :  { %1286 = dma.done.wait [#allocation5], 128  }
 0x165   :  { %1287 = vsyncadd [#allocation5], 4294967168 }
 0x166   :  { %815 = vsyncpa [#allocation4], 1 }
 0x167   :  { %816 = vsyncpa [#allocation7], 1 }
 0x168   :  { %817 = vsyncpa [#allocation5], 1 }

</bundles_post_ra>
